<compile_context>
chip_gen: v7x
topology: tpu7x:2x2x1
jax: 0.10.0
libtpu: 0.0.40
codegen_flags: <defaults>
</compile_context>

<pallas_src>
import functools

import jax
import jax.numpy as jnp
from jax import lax
from jax.experimental import pallas as pl
from jax.experimental.pallas import tpu as pltpu


def _gumbel_sampler_kernel(logits_ref, u_ref, gmap_ref,
                           yhard_ref, sg_ref, s_ref, pos_ref,
                           *, temp, eps):
    logits = logits_ref[...]                       # (TB, N) f32
    u = u_ref[...]                                 # (TB, N) f32, U[0, 1)
    shape = logits.shape
    n = shape[-1]

    # sample_gumbel_like:  g = -log(eps - log(u + eps))
    g = -jnp.log(eps - jnp.log(u + eps))

    # gumbel_softmax_sample.  One row max is enough: after z -= max(z) the max
    # lanes are exactly 0, so the reference's second subtraction is a no-op.
    z = logits + g
    if temp != 1.0:                                # statically specialized
        z = z * (1.0 / temp)
    z = z - jnp.max(z, axis=-1, keepdims=True)
    e = jnp.exp(z)
    sg = e / jnp.sum(e, axis=-1, keepdims=True)
    sg = jnp.maximum(sg, eps)                      # torch.max(soft, eps)

    # Plain softmax(alpha)
    e2 = jnp.exp(logits - jnp.max(logits, axis=-1, keepdims=True))
    s = e2 / jnp.sum(e2, axis=-1, keepdims=True)

    # Hard one-hot at the argmax (first occurrence, matching torch .max(1)).
    # argmax(sg) == argmax(z), and z's max lanes are exactly 0.0, so reuse z and
    # skip a second XLU row reduction.
    iota = lax.broadcasted_iota(jnp.int32, shape, 1)
    idx = jnp.min(jnp.where(z == 0.0, iota, n), axis=-1, keepdims=True)
    y_hard = (iota == idx).astype(jnp.float32)
    # TODO(synk): straight-through estimator (y_hard - sg.detach() + sg) only
    # affects the backward pass; wrap with jax.custom_vjp for training use.

    yhard_ref[...] = y_hard
    sg_ref[...] = sg.astype(sg_ref.dtype)
    s_ref[...] = s.astype(s_ref.dtype)

    # Base coordinate of the selected cell via the (idle) MXU: one-hot @ table.
    # gmap is (N, 128) bf16, x-coords in lane 0, y-coords in lane 1, rest zero.
    pos_ref[...] = jnp.dot(y_hard.astype(jnp.bfloat16), gmap_ref[...],
                           preferred_element_type=jnp.float32)


def _pick_batch_tile(B, block_b):
    """Batch rows per grid step: a multiple of 8 (or the full batch) so the block's
    second-minor dim keeps a legal tiling, and >= 2 tiles whenever the batch allows
    it so the 'parallel' grid axis can shard across v7x's two TensorCores."""
    if B > block_b:
        return block_b
    if B >= 16:
        return pl.cdiv(pl.cdiv(B, 2), 8) * 8
    return B


def gumbel_sampler(pos_map, key, *, temp=1.0, grid_size_out=16, scaling=0.5,
                   block_b=256, soft_dtype=jnp.float32):
    """Pallas implementation of GumbelSampler.forward (force_hard=True).

    block_b: batch rows per grid step.  256 keeps the double-buffered blocks plus
             Mosaic whole-block temporaries (~90 KiB/row at N ~= 1.1K) inside the
             48 MiB vmem limit set below (safe on v5e/v6e/v7x).
    soft_dtype: dtype of the two soft-probability outputs.  jnp.bfloat16 halves
             their HBM write traffic on mem-bound v5e/v6e; the default float32
             preserves the reference's output dtype.
    """
    B, C, H, W = pos_map.shape
    N = C * H * W
    G = grid_size_out
    side = 2 * G + 1
    assert N == side * side, "PosMap must flatten to (2*grid_size_out+1)^2"

    k_gumbel, k_jitter = jax.random.split(key)

    y_scores = pos_map.reshape(B, N).astype(jnp.float32)
    u = jax.random.uniform(k_gumbel, (B, N), dtype=jnp.float32)

    # get_gumbel_map base grid (no jitter): coord0 = col - G, coord1 = row - G,
    # laid out lane-dense as an (N, 128) bf16 table for the in-kernel MXU reduce.
    ii, jj = jnp.meshgrid(jnp.arange(side), jnp.arange(side), indexing="ij")
    base_x = (jj - G).astype(jnp.float32).reshape(-1)
    base_y = (ii - G).astype(jnp.float32).reshape(-1)
    gmap = jnp.zeros((N, 128), jnp.float32)
    gmap = gmap.at[:, 0].set(base_x).at[:, 1].set(base_y)
    gmap = gmap.astype(jnp.bfloat16)               # integer coords: exact in bf16

    TB = _pick_batch_tile(B, block_b)
    n_tiles = pl.cdiv(B, TB)

    kernel = functools.partial(_gumbel_sampler_kernel, temp=float(temp), eps=1e-10)

    out_shapes = (
        jax.ShapeDtypeStruct((B, N), jnp.float32),    # y_hard (one-hot)
        jax.ShapeDtypeStruct((B, N), soft_dtype),     # y_softmax_gumbel
        jax.ShapeDtypeStruct((B, N), soft_dtype),     # y_softmax
        jax.ShapeDtypeStruct((B, 128), jnp.float32),  # base pos (x lane 0, y lane 1)
    )

    row_spec = pl.BlockSpec((TB, N), lambda i: (i, 0))
    y_hard, sg, s, pos = pl.pallas_call(
        kernel,
        out_shape=out_shapes,
        grid=(n_tiles,),
        in_specs=[
            row_spec,                                  # logits tile
            row_spec,                                  # uniform noise tile
            pl.BlockSpec((N, 128), lambda i: (0, 0)),  # coord table (broadcast)
        ],
        out_specs=(
            row_spec,
            row_spec,
            row_spec,
            pl.BlockSpec((TB, 128), lambda i: (i, 0)),
        ),
        compiler_params=pltpu.CompilerParams(
            dimension_semantics=("parallel",),
            vmem_limit_bytes=48 * 1024 * 1024),
    )(y_scores, u, gmap)

    # get_gumbel_map jitter: only the jitter at the argmax cell ever reaches
    # final_pos, so the per-element jitter planes collapse to one (B, 2) draw —
    # distributionally identical to the reference, zero per-element kernel work.
    jitter = jax.random.uniform(k_jitter, (B, 2), dtype=jnp.float32)
    final_pos = (pos[:, :2] + jitter)[None, ...] * scaling        # (1, B, 2)

    final_pos_map = y_hard.reshape(B, C, H, W)
    y_softmax_gumbel = sg.reshape(B, C, H, W)
    y_softmax = s.reshape(B, C, H, W)
    return final_pos, final_pos_map, y_softmax_gumbel, y_softmax, y_scores


if __name__ == "__main__":
    key = jax.random.PRNGKey(0)
    k_in, k_noise = jax.random.split(key)

    G = 8                                        # grid_size_out (small demo size)
    B, C, H, W = 2, 1, 2 * G + 1, 2 * G + 1      # PosMap: (2, 1, 17, 17) -> N = 289
    scaling = 0.5
    pos_map = jax.random.normal(k_in, (B, C, H, W), dtype=jnp.float32)

    outs = gumbel_sampler(pos_map, k_noise, temp=1.0, grid_size_out=G,
                          scaling=scaling)
    outs = jax.block_until_ready(outs)
    final_pos, final_pos_map, y_softmax_gumbel, y_softmax, y_scores = outs

    # shapes
    assert final_pos.shape == (1, B, 2)
    assert final_pos_map.shape == (B, C, H, W)
    assert y_softmax_gumbel.shape == (B, C, H, W)
    assert y_softmax.shape == (B, C, H, W)
    assert y_scores.shape == (B, C * H * W)

    # one-hot rows sum to exactly 1; softmax rows sum to ~1 (exact division)
    assert jnp.allclose(final_pos_map.reshape(B, -1).sum(-1), 1.0)
    assert jnp.allclose(y_softmax.reshape(B, -1).sum(-1), 1.0, atol=1e-5)
    assert jnp.allclose(y_softmax_gumbel.reshape(B, -1).sum(-1), 1.0, atol=1e-5)
    assert jnp.all(jnp.isfinite(y_softmax_gumbel))

    # hard sample sits at the argmax of the gumbel-softmax sample
    assert jnp.all(jnp.argmax(final_pos_map.reshape(B, -1), -1)
                   == jnp.argmax(y_softmax_gumbel.reshape(B, -1), -1))

    # final_pos = (base coord of the selected cell + U[0,1) jitter) * scaling
    side = 2 * G + 1
    sel = jnp.argmax(final_pos_map.reshape(B, -1), axis=-1)
    base = jnp.stack([(sel % side) - G, (sel // side) - G],
                     axis=-1).astype(jnp.float32)
    frac = final_pos[0] / scaling - base
    assert jnp.all((frac >= 0.0) & (frac < 1.0))
    assert jnp.all(jnp.abs(final_pos) <= (G + 1) * scaling + 1e-4)

    print("KERNEL_OK")
</pallas_src>

<mosaic_0001>
module attributes {stable_mosaic.version = 11 : i64} {
  func.func @_gumbel_sampler_kernel(%arg0: i32, %arg1: memref<2x289xf32, #tpu.memory_space<vmem>>, %arg2: memref<2x289xf32, #tpu.memory_space<vmem>>, %arg3: memref<289x128xbf16, #tpu.memory_space<vmem>>, %arg4: memref<2x289xf32, #tpu.memory_space<vmem>>, %arg5: memref<2x289xf32, #tpu.memory_space<vmem>>, %arg6: memref<2x289xf32, #tpu.memory_space<vmem>>, %arg7: memref<2x128xf32, #tpu.memory_space<vmem>>) attributes {dimension_semantics = [#tpu.dimension_semantics<parallel>], iteration_bounds = array<i64: 1>, scalar_prefetch = 0 : i64, scratch_operands = 0 : i64, tpu.core_type = #tpu.core_type<tc>, window_params = [{transform_indices = @transform_0, window_bounds = array<i64: 2, 289>}, {transform_indices = @transform_1, window_bounds = array<i64: 2, 289>}, {pipeline_mode = #tpu.pipeline_mode<synchronous>, transform_indices = @transform_2, window_bounds = array<i64: 289, 128>}, {transform_indices = @transform_3, window_bounds = array<i64: 2, 289>}, {transform_indices = @transform_4, window_bounds = array<i64: 2, 289>}, {transform_indices = @transform_5, window_bounds = array<i64: 2, 289>}, {transform_indices = @transform_6, window_bounds = array<i64: 2, 128>}]} {
    %c0 = arith.constant 0 : index
    %c0_0 = arith.constant 0 : index
    %0 = vector.load %arg1[%c0, %c0_0] : memref<2x289xf32, #tpu.memory_space<vmem>>, vector<2x289xf32>
    %c0_1 = arith.constant 0 : index
    %c0_2 = arith.constant 0 : index
    %1 = vector.load %arg2[%c0_1, %c0_2] : memref<2x289xf32, #tpu.memory_space<vmem>>, vector<2x289xf32>
    %cst = arith.constant 1.000000e-10 : f32
    %2 = vector.broadcast %cst : f32 to vector<2x289xf32>
    %3 = arith.addf %1, %2 : vector<2x289xf32>
    %4 = math.log %3 : vector<2x289xf32>
    %cst_3 = arith.constant 1.000000e-10 : f32
    %5 = vector.broadcast %cst_3 : f32 to vector<2x289xf32>
    %6 = arith.subf %5, %4 : vector<2x289xf32>
    %7 = math.log %6 : vector<2x289xf32>
    %cst_4 = arith.constant 0.000000e+00 : f32
    %8 = vector.broadcast %cst_4 : f32 to vector<2x289xf32>
    %9 = arith.subf %8, %7 : vector<2x289xf32>
    %10 = arith.addf %0, %9 : vector<2x289xf32>
    %cst_5 = arith.constant dense<0xFF800000> : vector<2xf32>
    %11 = vector.multi_reduction <maximumf>, %10, %cst_5 [1] : vector<2x289xf32> to vector<2xf32>
    %12 = vector.shape_cast %11 : vector<2xf32> to vector<2x1xf32>
    %13 = vector.broadcast %12 : vector<2x1xf32> to vector<2x289xf32>
    %14 = arith.subf %10, %13 : vector<2x289xf32>
    %15 = math.exp %14 : vector<2x289xf32>
    %cst_6 = arith.constant dense<0.000000e+00> : vector<2xf32>
    %16 = vector.multi_reduction <add>, %15, %cst_6 [1] : vector<2x289xf32> to vector<2xf32>
    %17 = vector.shape_cast %16 : vector<2xf32> to vector<2x1xf32>
    %18 = vector.broadcast %17 : vector<2x1xf32> to vector<2x289xf32>
    %19 = arith.divf %15, %18 : vector<2x289xf32>
    %cst_7 = arith.constant 1.000000e-10 : f32
    %20 = vector.broadcast %cst_7 : f32 to vector<2x289xf32>
    %21 = arith.maximumf %19, %20 : vector<2x289xf32>
    %cst_8 = arith.constant dense<0xFF800000> : vector<2xf32>
    %22 = vector.multi_reduction <maximumf>, %0, %cst_8 [1] : vector<2x289xf32> to vector<2xf32>
    %23 = vector.shape_cast %22 : vector<2xf32> to vector<2x1xf32>
    %24 = vector.broadcast %23 : vector<2x1xf32> to vector<2x289xf32>
    %25 = arith.subf %0, %24 : vector<2x289xf32>
    %26 = math.exp %25 : vector<2x289xf32>
    %cst_9 = arith.constant dense<0.000000e+00> : vector<2xf32>
    %27 = vector.multi_reduction <add>, %26, %cst_9 [1] : vector<2x289xf32> to vector<2xf32>
    %28 = vector.shape_cast %27 : vector<2xf32> to vector<2x1xf32>
    %29 = vector.broadcast %28 : vector<2x1xf32> to vector<2x289xf32>
    %30 = arith.divf %26, %29 : vector<2x289xf32>
    %31 = tpu.iota {dimensions = array<i32: 1>} : vector<2x289xi32>
    %cst_10 = arith.constant 0.000000e+00 : f32
    %32 = vector.broadcast %cst_10 : f32 to vector<2x289xf32>
    %33 = arith.cmpf oeq, %14, %32 : vector<2x289xf32>
    %c289_i32 = arith.constant 289 : i32
    %34 = vector.broadcast %c289_i32 : i32 to vector<2x289xi32>
    %35 = arith.select %33, %31, %34 : vector<2x289xi1>, vector<2x289xi32>
    %cst_11 = arith.constant dense<2147483647> : vector<2xi32>
    %36 = vector.multi_reduction <minsi>, %35, %cst_11 [1] : vector<2x289xi32> to vector<2xi32>
    %37 = vector.shape_cast %36 : vector<2xi32> to vector<2x1xi32>
    %38 = vector.broadcast %37 : vector<2x1xi32> to vector<2x289xi32>
    %39 = arith.cmpi eq, %31, %38 : vector<2x289xi32>
    %40 = arith.extui %39 : vector<2x289xi1> to vector<2x289xi32>
    %41 = arith.sitofp %40 : vector<2x289xi32> to vector<2x289xf32>
    %c0_12 = arith.constant 0 : index
    %c0_13 = arith.constant 0 : index
    %42 = vector.load %arg4[%c0_12, %c0_13] : memref<2x289xf32, #tpu.memory_space<vmem>>, vector<2x289xf32>
    tpu.vector_store %arg4[%c0_12, %c0_13], %41 {strides = array<i32>} : memref<2x289xf32, #tpu.memory_space<vmem>>, vector<2x289xf32>,
    %c0_14 = arith.constant 0 : index
    %c0_15 = arith.constant 0 : index
    %43 = vector.load %arg5[%c0_14, %c0_15] : memref<2x289xf32, #tpu.memory_space<vmem>>, vector<2x289xf32>
    tpu.vector_store %arg5[%c0_14, %c0_15], %21 {strides = array<i32>} : memref<2x289xf32, #tpu.memory_space<vmem>>, vector<2x289xf32>,
    %c0_16 = arith.constant 0 : index
    %c0_17 = arith.constant 0 : index
    %44 = vector.load %arg6[%c0_16, %c0_17] : memref<2x289xf32, #tpu.memory_space<vmem>>, vector<2x289xf32>
    tpu.vector_store %arg6[%c0_16, %c0_17], %30 {strides = array<i32>} : memref<2x289xf32, #tpu.memory_space<vmem>>, vector<2x289xf32>,
    %45 = arith.truncf %41 : vector<2x289xf32> to vector<2x289xbf16>
    %c0_18 = arith.constant 0 : index
    %c0_19 = arith.constant 0 : index
    %46 = vector.load %arg3[%c0_18, %c0_19] : memref<289x128xbf16, #tpu.memory_space<vmem>>, vector<289x128xbf16>
    %cst_20 = arith.constant dense<0.000000e+00> : vector<2x128xf32>
    %47 = tpu.matmul %45, %46, %cst_20 {dimension_numbers = #tpu.dot_dimension_numbers<[1], [0], [0], [1], [0, 0, 1, 1], [], []>} : vector<2x289xbf16>, vector<289x128xbf16>, vector<2x128xf32> -> vector<2x128xf32>
    %c0_21 = arith.constant 0 : index
    %c0_22 = arith.constant 0 : index
    %48 = vector.load %arg7[%c0_21, %c0_22] : memref<2x128xf32, #tpu.memory_space<vmem>>, vector<2x128xf32>
    tpu.vector_store %arg7[%c0_21, %c0_22], %47 {strides = array<i32>} : memref<2x128xf32, #tpu.memory_space<vmem>>, vector<2x128xf32>,
    return
  }
  func.func @transform_0(%arg0: i32) -> (i32, i32) {
    %c0_i32 = arith.constant 0 : i32
    %c0_i32_0 = arith.constant 0 : i32
    return %arg0, %c0_i32 : i32, i32
  }
  func.func @transform_1(%arg0: i32) -> (i32, i32) {
    %c0_i32 = arith.constant 0 : i32
    %c0_i32_0 = arith.constant 0 : i32
    return %arg0, %c0_i32 : i32, i32
  }
  func.func @transform_2(%arg0: i32) -> (i32, i32) {
    %c0_i32 = arith.constant 0 : i32
    %c0_i32_0 = arith.constant 0 : i32
    %c0_i32_1 = arith.constant 0 : i32
    return %c0_i32, %c0_i32_0 : i32, i32
  }
  func.func @transform_3(%arg0: i32) -> (i32, i32) {
    %c0_i32 = arith.constant 0 : i32
    %c0_i32_0 = arith.constant 0 : i32
    return %arg0, %c0_i32 : i32, i32
  }
  func.func @transform_4(%arg0: i32) -> (i32, i32) {
    %c0_i32 = arith.constant 0 : i32
    %c0_i32_0 = arith.constant 0 : i32
    return %arg0, %c0_i32 : i32, i32
  }
  func.func @transform_5(%arg0: i32) -> (i32, i32) {
    %c0_i32 = arith.constant 0 : i32
    %c0_i32_0 = arith.constant 0 : i32
    return %arg0, %c0_i32 : i32, i32
  }
  func.func @transform_6(%arg0: i32) -> (i32, i32) {
    %c0_i32 = arith.constant 0 : i32
    %c0_i32_0 = arith.constant 0 : i32
    return %arg0, %c0_i32 : i32, i32
  }
}

</mosaic_0001>

<bundles_post_ra>
// kernel: tpu_custom_call.1
= control target key start
LH: loop header
LB: loop body
LE: loop exit
PB: predicated region body
PF: predicated region fallthrough
CT: control target
= control target key end

     0   :  { %12 = vsyncpa [#allocation3], 0  ;;  %s1110_s0 = inlined_call_operand.hbm [shape: f32[2,289], index: 0, kind: input, shape index: {}]   ;;  %s1111_s1 = inlined_call_operand.hbm [shape: f32[2,289], index: 1, kind: input, shape index: {}]   ;;  %s1112_s2 = inlined_call_operand.hbm [shape: bf16[289,128], index: 2, kind: input, shape index: {}]   ;;  %s1113_s3 = inlined_call_operand.hbm [shape: f32[2,289], index: 3, kind: output, shape index: {0}]   ;;  %s1114_s4 = inlined_call_operand.hbm [shape: f32[2,289], index: 4, kind: output, shape index: {1}]   ;;  %s1115_s5 = inlined_call_operand.hbm [shape: f32[2,289], index: 5, kind: output, shape index: {2}]   ;;  %s1116_s6 = inlined_call_operand.hbm [shape: f32[2,128], index: 6, kind: output, shape index: {3}]  }
   0x1   :  { %13 = vsyncpa [#allocation6], 0 }
   0x2   :  { %14 = vsyncpa [#allocation4], 0 }
   0x3   :  { %15 = vsyncpa [#allocation10], 0 }
   0x4   :  { %16 = vsyncpa [#allocation13], 0  ;;  %s894_s21 = smov [#allocation5]   ;;  %s895_s23 = smov [#allocation2]  }
   0x5   :  { %s33_s22 = sshll.u32 %s894_s21, 4  ;;  %s23_s24 = sshll.u32 %s895_s23, 4  ;;  %s34_s22 = int_to_ptr.vmem [resolvable:$true] %s33_s22  ;;  %s24_s24 = int_to_ptr.vmem [resolvable:$true] %s23_s24 }
   0x6   :  { %s730_s27 = scalar_lea.hbm %s1111_s1, 96 }
   0x7   :  { %p731_p0 = scmp.ne.s32.totalorder %s1111_s1, %s730_s27  ;;  %p734_p1 = scmp.lt.u32.totalorder %s730_s27, %s1111_s1 }
   0x9   :  { %p736_p2 = pnand %p734_p1, %p731_p0 }
   0xb   :  { %739 = shalt.err (!%p736_p2)
}
   0xc   :  { %s740_s8 = scalar_lea.vmem %s34_s22, 96  ;;  %p745_p4 = scmp.lt.s32.totalorder %s34_s22, %s34_s22 }
   0xd   :  { %p741_p3 = scmp.ne.s32.totalorder %s34_s22, %s740_s8  ;;  %p746_p5 = scmp.lt.s32.totalorder %s740_s8, %s740_s8 }
   0xf   :  { %p747_p6 = por %p746_p5, %p745_p4 }
  0x11   :  { %p748_p7 = pnand %p747_p6, %p741_p3 }
  0x13   :  { %751 = shalt.err (!%p748_p7)
}
  0x14   :  { %36 = dma.hbm_to_vmem [thread:$0]  %s1111_s1, 96, %s34_s22, [#allocation6]  }
  0x15   :  { %s752_s13 = scalar_lea.hbm %s1110_s0, 96 }
  0x16   :  { %p753_p8 = scmp.ne.s32.totalorder %s1110_s0, %s752_s13  ;;  %p756_p9 = scmp.lt.u32.totalorder %s752_s13, %s1110_s0 }
  0x18   :  { %p758_p10 = pnand %p756_p9, %p753_p8 }
  0x1a   :  { %761 = shalt.err (!%p758_p10)
}
  0x1b   :  { %s762_s18 = scalar_lea.vmem %s24_s24, 96  ;;  %p767_p12 = scmp.lt.s32.totalorder %s24_s24, %s24_s24 }
  0x1c   :  { %p763_p11 = scmp.ne.s32.totalorder %s24_s24, %s762_s18  ;;  %p768_p13 = scmp.lt.s32.totalorder %s762_s18, %s762_s18 }
  0x1e   :  { %p769_p0 = por %p768_p13, %p767_p12 }
  0x20   :  { %p770_p1 = pnand %p769_p0, %p763_p11 }
  0x22   :  { %773 = shalt.err (!%p770_p1)
}
  0x23   :  { %26 = dma.hbm_to_vmem [thread:$0]  %s1110_s0, 96, %s24_s24, [#allocation3]  }
  0x24   :  { %s896_s20 = smov [#allocation7]   ;;  %s774_s25 = scalar_lea.hbm %s1112_s2, 2368 }
  0x25   :  { %s42_s21 = sshll.u32 %s896_s20, 4  ;;  %p775_p2 = scmp.ne.s32.totalorder %s1112_s2, %s774_s25  ;;  %s43_s21 = int_to_ptr.vmem [resolvable:$true] %s42_s21 }
  0x26   :  { %p778_p3 = scmp.lt.u32.totalorder %s774_s25, %s1112_s2 }
  0x28   :  { %p780_p4 = pnand %p778_p3, %p775_p2 }
  0x2a   :  { %783 = shalt.err (!%p780_p4)
}
  0x2b   :  { %s784_s30 = scalar_lea.vmem %s43_s21, 2368  ;;  %p789_p6 = scmp.lt.s32.totalorder %s43_s21, %s43_s21 }
  0x2c   :  { %p785_p5 = scmp.ne.s32.totalorder %s43_s21, %s784_s30  ;;  %p790_p7 = scmp.lt.s32.totalorder %s784_s30, %s784_s30 }
  0x2e   :  { %p791_p8 = por %p790_p7, %p789_p6 }
  0x30   :  { %p792_p9 = pnand %p791_p8, %p785_p5 }
  0x32   :  { %795 = shalt.err (!%p792_p9)
}
  0x33   :  { %s897_s0 = smov 64   ;;  %s898_s24 = smov 4  }
  0x34   :  { %48 = dma.hbm_to_vmem [thread:$0]  %s1112_s2, 2368, %s43_s21, [#allocation6], %s897_s0, %s897_s0, %s898_s24  }
  0x35   :  { %884 = dma.done.wait [#allocation3], 96  }
  0x36   :  { %885 = vsyncadd [#allocation3], 4294967200 }
  0x37   :  { %886 = dma.done.wait [#allocation6], 2464  }
  0x38   :  { %887 = vsyncadd [#allocation6], 4294964832  ;;  %v60_v0 = vld [vmem:[#allocation5] sm:$0x3f]  ;;  %v899_v5 = vmov 1983009808   ;;  %v74_v7 = vlaneseq }
  0x39   :  { %v61_v1 = vadd.f32 1e-10, %v60_v0  ;;  %v72_v6 = vunpack.c.l.s4 %v899_v5  ;;  %v980_v12 = vld [vmem:[#allocation2] sm:$0x3f]  ;;  %vm89_vm0 = vcmask 1041408   ;;  %vm92_vm1 = vcmask 263168  }
  0x3a   :  { %v75_v9 = vshrl.u32 %v74_v7, 7  ;;  %v990_v25 = vand.u32 127, %v74_v7  ;;  %v900_v26 = vmov 269488144   ;;  %v699_v62 = vld [vmem:[#allocation7 + $0x40] sm:$0xff]   ;;  %v701_v0 = vld [vmem:[#allocation7 + $0x48] sm:$0xff]  }
  0x3b   :  { %718 = vlog2.f32 %v61_v1  ;;  %v73_v8 = vunpack.c.0.s8 %v72_v6  ;;  %v100_v27 = vunpack.c.l.s4 %v900_v26  ;;  %v700_v63 = vld [vmem:[#allocation7] sm:$0xff]   ;;  %v901_v1 = vmov 0.0   ;;  %647 = vmatprep.subr.bf16.mxu0 %v699_v62  ;;  %v704_v5 = vld [vmem:[#allocation7 + $0x10] sm:$0xff]   ;;  %v705_v6 = vld [vmem:[#allocation7 + $0x58] sm:$0xff]   ;;  %s905_s2 = smov [#allocation9]   ;;  %s906_s10 = smov [#allocation8]  }
  0x3c   :  { %v993_v28 = vadd.s32 128, %v990_v25  ;;  %v996_v30 = vadd.s32 256, %v990_v25  ;;  %673 = vmatprep.subr.bf16.mxu1 %v901_v1  ;;  %648 = vmatpush3.bf16.msra.mxu0 %v700_v63  ;;  %v706_v7 = vld [vmem:[#allocation7 + $0x18] sm:$0xff]   ;;  %vm314_vm6 = vcmask 1043458   ;;  %vm476_vm7 = vcmask 1040384   ;;  %s579_s9 = sshll.u32 %s905_s2, 4  ;;  %s580_s9 = int_to_ptr.vmem [resolvable:$true] %s579_s9 }
  0x3d   :  { %v982_v14 = vsub.s32 %v73_v8, %v75_v9  ;;  %v101_v29 = vunpack.c.0.s8 %v100_v27  ;;  %649 = vmatprep.subr.bf16.mxu0 %v701_v0  ;;  %v707_v8 = vld [vmem:[#allocation7 + $0x60] sm:$0xff]   ;;  %vm315_vm8 = vmor %vm314_vm6, %vm89_vm0  ;;  %vm316_vm9 = vcmask 267268   ;;  %vm903_vm11 = vmmov 0   ;;  %s569_s11 = sshll.u32 %s906_s10, 4  ;;  %s796_s12 = scalar_lea.vmem %s580_s9, 96  ;;  %s570_s11 = int_to_ptr.vmem [resolvable:$true] %s569_s11 }
  0x3e   :  { %v231_v31 = vcombine.low %v990_v25, %v993_v28  ;;  %vm1035_vm10 = vmor %vm316_vm9, %vm315_vm8  ;;  %679 = vmatprep.mubr.msk.bf16.mxu1 %vm903_vm11, %v901_v1  ;;  %p797_p10 = scmp.ne.s32.totalorder %s580_s9, %s796_s12  ;;  %p801_p11 = scmp.lt.s32.totalorder %s580_s9, %s580_s9 }
  0x3f   :  { %v1000_v32 = vsub.s32 %v101_v29, %v75_v9  ;;  %v245_v34 = vrot.slane %v996_v30, %v982_v14  ;;  %v708_v9 = vld [vmem:[#allocation7 + $0x20] sm:$0xff]   ;;  %p802_p12 = scmp.lt.s32.totalorder %s796_s12, %s796_s12 }
  0x40   :  { %v238_v33 = vrot.slane %v231_v31, %v982_v14 }
  0x41   :  { %p803_p13 = por %p802_p12, %p801_p11 }
  0x42   :  { %v246_v37 = vcombine.low %v238_v33, %v245_v34  ;;  %v713_v34 = vld [vmem:[#allocation7 + $0x30] sm:$0xff]  }
  0x43   :  { %p804_p0 = pnand %p803_p13, %p797_p10 }
  0x45   :  { %v719_v2 = vpop.eup %718 }
  0x46   :  { %v63_v3 = vmul.f32 0.6931472, %v719_v2  ;;  %v702_v2 = vld [vmem:[#allocation7 + $0x8] sm:$0xff]  }
  0x47   :  { %650 = vmatpush3.bf16.msra.mxu0 %v702_v2 }
  0x48   :  { %v64_v4 = vsub.f32 1e-10, %v63_v3  ;;  %v703_v3 = vld [vmem:[#allocation7 + $0x50] sm:$0xff]  }
  0x49   :  { %651 = vmatprep.subr.bf16.mxu0 %v703_v3 }
  0x4a   :  { %720 = vlog2.f32 %v64_v4  ;;  %v711_v4 = vld [vmem:[#allocation7 + $0x80] sm:$0xff]  }
  0x4b   :  { %674 = vmatpush3.bf16.msra.mxu1 %v711_v4  ;;  %652 = vmatpush3.bf16.msra.mxu0 %v704_v5 }
  0x4c   :  { %675 = vmatprep.subr.bf16.mxu1 %v901_v1  ;;  %653 = vmatprep.subr.bf16.mxu0 %v705_v6 }
  0x4f   :  { %654 = vmatpush3.bf16.msra.mxu0 %v706_v7 }
  0x50   :  { %655 = vmatprep.subr.bf16.mxu0 %v707_v8 }
  0x53   :  { %656 = vmatpush3.bf16.msra.mxu0 %v708_v9 }
  0x54   :  { %v721_v10 = vpop.eup %720 }
  0x55   :  { %v66_v11 = vmul.f32 0.6931472, %v721_v10  ;;  %v709_v10 = vld [vmem:[#allocation7 + $0x68] sm:$0xff]  }
  0x56   :  { %657 = vmatprep.subr.bf16.mxu0 %v709_v10 }
  0x57   :  { %v67_v13 = vsub.f32 0.0, %v66_v11  ;;  %v710_v11 = vld [vmem:[#allocation7 + $0x28] sm:$0xff]  }
  0x58   :  { %658 = vmatpush3.bf16.msra.mxu0 %v710_v11 }
  0x59   :  { %v68_v15 = vadd.f32 %v67_v13, %v980_v12  ;;  %v712_v13 = vld [vmem:[#allocation7 + $0x70] sm:$0xff]  }
  0x5a   :  { %659 = vmatprep.subr.bf16.mxu0 %v712_v13 }
  0x5b   :  { %v70_v16 = vcombine.high %v68_v15, %v68_v15  ;;  %v77_v17 = vrot.slane %v68_v15, %v982_v14 }
  0x5c   :  { %660 = vmatpush3.bf16.msra.mxu0 %v713_v34 }
  0x5d   :  { %v84_v18 = vrot.slane %v70_v16, %v982_v14  ;;  %v85_v19 = vcombine.high %v77_v17, %v77_v17  ;;  %v90_v20 = vsel %vm89_vm0, %v77_v17, -inf  ;;  %v150_v16 = vcombine.high %v980_v12, %v980_v12 }
  0x5f   :  { %v91_v21 = vsel %vm89_vm0, %v85_v19, -inf  ;;  %v93_v22 = vsel %vm92_vm1, %v84_v18, -inf  ;;  %v164_v19 = vrot.slane %v150_v16, %v982_v14 }
  0x60   :  { %v94_v23 = vmax.f32 %v90_v20, %v91_v21 }
  0x61   :  { %v171_v26 = vsel %vm92_vm1, %v164_v19, -inf }
  0x62   :  { %v95_v24 = vmax.f32 %v94_v23, %v93_v22 }
  0x64   :  { %96 = vmax.xlane.f32.xlu0 %v95_v24 }
  0xf1   :  { %v97_v35 = vpop.xlane.xlu0 %96 }
  0xf2   :  { %v105_v36 = vrot.slane %v97_v35, %v1000_v32  ;;  %v714_v35 = vld [vmem:[#allocation7 + $0x88] sm:$0xff]  }
  0xf3   :  { %676 = vmatpush3.bf16.msra.mxu1 %v714_v35 }
  0xf4   :  { %v107_v38 = vsub.f32 %v68_v15, %v105_v36  ;;  %v157_v15 = vrot.slane %v980_v12, %v982_v14  ;;  %v715_v36 = vld [vmem:[#allocation7 + $0x78] sm:$0xff]   ;;  %677 = vmatprep.subr.bf16.mxu1 %v901_v1 }
  0xf5   :  { %661 = vmatprep.subr.bf16.mxu0 %v715_v36 }
  0xf6   :  { %v108_v39 = vmul.f32 1.442695, %v107_v38  ;;  %vm230_vm2 = vcmp.eq.f32.partialorder %v107_v38, 0.0  ;;  %v165_v17 = vcombine.high %v157_v15, %v157_v15  ;;  %v169_v20 = vsel %vm89_vm0, %v157_v15, -inf  ;;  %v716_v38 = vld [vmem:[#allocation7 + $0x38] sm:$0xff]  }
  0xf7   :  { %v247_v40 = vsel %vm230_vm2, %v246_v37, 289  ;;  %v717_v37 = vld [vmem:[#allocation7 + $0x90] ss:$0 sps:$4 sm:$0x11]   ;;  %662 = vmatpush3.bf16.msra.mxu0 %v716_v38  ;;  %vm472_vm2 = vcmask 269312  }
  0xf8   :  { %722 = vpow2.f32 %v108_v39  ;;  %v248_v41 = vcombine.high %v247_v40, %v247_v40  ;;  %v255_v42 = vrot.slane %v247_v40, %v982_v14  ;;  %v170_v21 = vsel %vm89_vm0, %v165_v17, -inf }
  0xf9   :  { %v172_v22 = vmax.f32 %v169_v20, %v170_v21  ;;  %v902_v39 = vmov 0  }
  0xfa   :  { %v263_v43 = vcombine.high %v255_v42, %v255_v42  ;;  %v262_v44 = vrot.slane %v248_v41, %v982_v14  ;;  %v264_v45 = vsel %vm89_vm0, %v255_v42, 2147483647  ;;  %v478_v40 = vsel %vm476_vm7, 65535, %v902_v39 }
  0xfb   :  { %v173_v29 = vmax.f32 %v172_v22, %v171_v26  ;;  %v480_v42 = vand.u32 %v717_v37, %v478_v40 }
  0xfc   :  { %v265_v46 = vsel %vm89_vm0, %v263_v43, 2147483647  ;;  %v266_v47 = vsel %vm92_vm1, %v262_v44, 2147483647 }
  0xfd   :  { %vm267_vm3 = vcmp.lt.s32.totalorder %v264_v45, %v265_v46  ;;  %678 = vmatpush3.bf16.msra.mxu1 %v480_v42 }
  0xfe   :  { %v268_v48 = vsel %vm267_vm3, %v264_v45, %v265_v46 }
  0xff   :  { %vm269_vm4 = vcmp.lt.s32.totalorder %v268_v48, %v266_v47 }
 0x100   :  { %v270_v49 = vsel %vm269_vm4, %v268_v48, %v266_v47 }
 0x101   :  { %v272_v50 = vshra.s32 %v270_v49, 16  ;;  %v271_v18 = vand.u32 65535, %v270_v49 }
 0x102   :  { %v1011_v51 = vpop.eup %722 }
 0x103   :  { %v274_v52 = vcvt.s32.f32 %v272_v50  ;;  %v111_v53 = vcombine.high %v1011_v51, %v1011_v51  ;;  %v118_v54 = vrot.slane %v1011_v51, %v982_v14  ;;  %v273_v24 = vcvt.s32.f32 %v271_v18 }
 0x105   :  { %275 = vmin.xlane.f32.xlu0 %v274_v52  ;;  %v125_v55 = vrot.slane %v111_v53, %v982_v14  ;;  %v126_v56 = vcombine.high %v118_v54, %v118_v54  ;;  %v130_v57 = vsel %vm89_vm0, %v118_v54, 0.0 }
 0x107   :  { %v131_v58 = vsel %vm89_vm0, %v126_v56, 0.0  ;;  %v133_v60 = vsel %vm92_vm1, %v125_v55, 0.0 }
 0x108   :  { %v132_v59 = vadd.f32 %v131_v58, %v130_v57  ;;  %v904_v58 = vmov 1.0|1.0  }
 0x10a   :  { %v134_v61 = vadd.f32 %v133_v60, %v132_v59 }
 0x10c   :  { %135 = vadd.xlane.f32.xlu0 %v134_v61 }
 0x192   :  { %v276_v23 = vpop.xlane.xlu0 %275 }
 0x193   :  { %vm277_vm5 = vcmp.eq.f32.partialorder %v274_v52, %v276_v23  ;;  %v282_v46 = vcvt.f32.s32 %v276_v23 }
 0x194   :  { %v278_v27 = vsel %vm277_vm5, %v273_v24, inf }
 0x195   :  { %279 = vmin.xlane.f32.xlu1 %v278_v27  ;;  %v283_v48 = vshll.u32 %v282_v46, 16 }
 0x199   :  { %174 = vmax.xlane.f32.xlu1 %v173_v29  ;;  %v136_v31 = vpop.xlane.xlu0 %135 }
 0x19a   :  { %v144_v33 = vrot.slane %v136_v31, %v1000_v32 }
 0x19c   :  { %724 = vrcp.f32 %v144_v33 }
 0x1a6   :  { %v725_v41 = vpop.eup %724 }
 0x1a7   :  { %v147_v43 = vmul.f32 %v725_v41, %v1011_v51 }
 0x1a9   :  { %v148_v45 = vmax.f32 %v147_v43, 1e-10 }
 0x1ab   :  { %319 = vst.msk [vmem:[#allocation9] sm:$0x3f] %vm1035_vm10, %v148_v45 }
 0x222   :  { %v280_v47 = vpop.xlane.xlu1 %279 }
 0x223   :  { %v281_v49 = vcvt.f32.s32 %v280_v47 }
 0x225   :  { %v284_v50 = vadd.s32 %v283_v48, %v281_v49 }
 0x226   :  { %v175_v52 = vpop.xlane.xlu1 %174 }
 0x227   :  { %vm287_vm12 = vcmp.eq.s32.totalorder %v996_v30, %v284_v50  ;;  %v183_v51 = vrot.slane %v175_v52, %v1000_v32  ;;  %vm285_vm13 = vcmp.eq.s32.totalorder %v990_v25, %v284_v50  ;;  %vm286_vm14 = vcmp.eq.s32.totalorder %v993_v28, %v284_v50 }
 0x228   :  { %v622_v53 = vsel %vm287_vm12, 1.0, %v901_v1  ;;  %v620_v54 = vsel %vm285_vm13, 1.0, %v901_v1  ;;  %v621_v55 = vsel %vm286_vm14, 1.0, %v901_v1  ;;  %vm642_vm15 = vmpackc.low %vm286_vm14, %vm286_vm14 }
 0x229   :  { %v185_v56 = vsub.f32 %v980_v12, %v183_v51  ;;  %v297_v57 = vcombine.low %v620_v54, %v621_v55  ;;  %643 = vmatprep.mubr.msk.bf16.mxu0 %vm642_vm15, %v904_v58  ;;  %vm644_vm3 = vmpackc.low %vm285_vm13, %vm285_vm13  ;;  %v323_v30 = vpack.c.bf16 %v622_v53, %v622_v53  ;;  %v311_v28 = vrot.slane %v622_v53, %v982_v14 }
 0x22a   :  { %645 = vmatmul.mubr.msk.bf16.vlgmr.msra.gmra.mrb[0].mxu0 %vm644_vm3, %v904_v58 }
 0x22b   :  { %v186_v59 = vmul.f32 1.442695, %v185_v56  ;;  %v304_v25 = vrot.slane %v297_v57, %v982_v14  ;;  %680 = vmatmul.mubr.msk.bf16.vlgmr.msra.gmra.mrb[0].mxu1 %vm472_vm2, %v323_v30 }
 0x22d   :  { %726 = vpow2.f32 %v186_v59  ;;  %v312_v60 = vcombine.low %v304_v25, %v311_v28 }
 0x22f   :  { %318 = vst.msk [vmem:[#allocation8] sm:$0x3f] %vm1035_vm10, %v312_v60 }
 0x237   :  { %v727_v61 = vpop.eup %726 }
 0x238   :  { %v189_v62 = vcombine.high %v727_v61, %v727_v61  ;;  %v196_v12 = vrot.slane %v727_v61, %v982_v14 }
 0x23a   :  { %v203_v63 = vrot.slane %v189_v62, %v982_v14  ;;  %v204_v0 = vcombine.high %v196_v12, %v196_v12  ;;  %v208_v1 = vsel %vm89_vm0, %v196_v12, 0.0 }
 0x23c   :  { %v209_v2 = vsel %vm89_vm0, %v204_v0, 0.0  ;;  %v211_v3 = vsel %vm92_vm1, %v203_v63, 0.0 }
 0x23d   :  { %v210_v4 = vadd.f32 %v209_v2, %v208_v1 }
 0x23f   :  { %v212_v5 = vadd.f32 %v211_v3, %v210_v4 }
 0x241   :  { %213 = vadd.xlane.f32.xlu1 %v212_v5 }
 0x242   :  { %807 = shalt.err (!%p804_p0)
}
 0x243   :  { %s808_s15 = scalar_lea.hbm %s1114_s4, 96 }
 0x244   :  { %p809_p1 = scmp.ne.s32.totalorder %s1114_s4, %s808_s15  ;;  %p812_p2 = scmp.lt.u32.totalorder %s808_s15, %s1114_s4 }
 0x246   :  { %p814_p3 = pnand %p812_p2, %p809_p1 }
 0x248   :  { %817 = shalt.err (!%p814_p3)
}
 0x249   :  { %582 = dma.vmem_to_hbm [thread:$0]  %s580_s9, 96, %s1114_s4, [#allocation10]  }
 0x24a   :  { %s818_s21 = scalar_lea.vmem %s570_s11, 96  ;;  %p823_p5 = scmp.lt.s32.totalorder %s570_s11, %s570_s11 }
 0x24b   :  { %p819_p4 = scmp.ne.s32.totalorder %s570_s11, %s818_s21  ;;  %p824_p6 = scmp.lt.s32.totalorder %s818_s21, %s818_s21 }
 0x24d   :  { %p825_p7 = por %p824_p6, %p823_p5 }
 0x24f   :  { %p826_p8 = pnand %p825_p7, %p819_p4 }
 0x251   :  { %829 = shalt.err (!%p826_p8)
}
 0x252   :  { %s830_s25 = scalar_lea.hbm %s1113_s3, 96 }
 0x253   :  { %p831_p9 = scmp.ne.s32.totalorder %s1113_s3, %s830_s25  ;;  %p834_p10 = scmp.lt.u32.totalorder %s830_s25, %s1113_s3 }
 0x255   :  { %p836_p11 = pnand %p834_p10, %p831_p9 }
 0x257   :  { %839 = shalt.err (!%p836_p11)
}
 0x258   :  { %572 = dma.vmem_to_hbm [thread:$0]  %s570_s11, 96, %s1113_s3, [#allocation4]  }
 0x259   :  { %s907_s0 = smov [#allocation11]  }
 0x25a   :  { %s589_s24 = sshll.u32 %s907_s0, 4  ;;  %s590_s24 = int_to_ptr.vmem [resolvable:$true] %s589_s24 }
 0x25b   :  { %s840_s7 = scalar_lea.vmem %s590_s24, 96  ;;  %p845_p13 = scmp.lt.s32.totalorder %s590_s24, %s590_s24 }
 0x25c   :  { %p841_p12 = scmp.ne.s32.totalorder %s590_s24, %s840_s7  ;;  %p846_p0 = scmp.lt.s32.totalorder %s840_s7, %s840_s7 }
 0x25e   :  { %p847_p1 = por %p846_p0, %p845_p13 }
 0x260   :  { %p848_p2 = pnand %p847_p1, %p841_p12 }
 0x2ce   :  { %v214_v14 = vpop.xlane.xlu1 %213 }
 0x2cf   :  { %v222_v6 = vrot.slane %v214_v14, %v1000_v32 }
 0x2d1   :  { %728 = vrcp.f32 %v222_v6 }
 0x2db   :  { %v729_v7 = vpop.eup %728 }
 0x2dc   :  { %v225_v8 = vmul.f32 %v729_v7, %v727_v61 }
 0x2de   :  { %320 = vst.msk [vmem:[#allocation11] sm:$0x3f] %vm1035_vm10, %v225_v8 }
 0x2df   :  { %851 = shalt.err (!%p848_p2)
}
 0x2e0   :  { %s852_s2 = scalar_lea.hbm %s1115_s5, 96 }
 0x2e1   :  { %p853_p3 = scmp.ne.s32.totalorder %s1115_s5, %s852_s2  ;;  %p856_p4 = scmp.lt.u32.totalorder %s852_s2, %s1115_s5 }
 0x2e3   :  { %p858_p5 = pnand %p856_p4, %p853_p3 }
 0x2e5   :  { %861 = shalt.err (!%p858_p5)
}
 0x2e6   :  { %592 = dma.vmem_to_hbm [thread:$0]  %s590_s24, 96, %s1115_s5, [#allocation10]  }
 0x2e7   :  { %s908_s15 = smov [#allocation12]  }
 0x2e8   :  { %s599_s16 = sshll.u32 %s908_s15, 4  ;;  %s600_s16 = int_to_ptr.vmem [resolvable:$true] %s599_s16 }
 0x2e9   :  { %s862_s17 = scalar_lea.vmem %s600_s16, 32  ;;  %p867_p7 = scmp.lt.s32.totalorder %s600_s16, %s600_s16 }
 0x2ea   :  { %p863_p6 = scmp.ne.s32.totalorder %s600_s16, %s862_s17  ;;  %p868_p8 = scmp.lt.s32.totalorder %s862_s17, %s862_s17 }
 0x2ec   :  { %p869_p9 = por %p868_p8, %p867_p7 }
 0x2ee   :  { %p870_p10 = pnand %p869_p9, %p863_p6 }
 0x2fd   :  { %v663_v32 = vpop.f32.mrb[0].mxu0 }
 0x2fe   :  { %v664_v9 = vpop.f32.mrb[1].mxu0  ;;  %v556_v10 = vpop.f32.mrb[0].mxu1 }
 0x2ff   :  { %v665_v11 = vadd.f32 %v664_v9, %v663_v32  ;;  %v666_v13 = vpop.f32.mrb[2].mxu0  ;;  %v681_v15 = vpop.f32.mrb[1].mxu1 }
 0x300   :  { %v667_v16 = vpop.f32.mrb[3].mxu0  ;;  %v559_v17 = vpop.f32.mrb[2].mxu1 }
 0x301   :  { %v557_v18 = vadd.f32 %v665_v11, %v556_v10  ;;  %v682_v19 = vpop.f32.mrb[3].mxu1 }
 0x303   :  { %562 = vst [vmem:[#allocation12] sm:$0x3] %v557_v18 }
 0x304   :  { %873 = shalt.err (!%p870_p10)
}
 0x305   :  { %s874_s1 = scalar_lea.hbm %s1116_s6, 32 }
 0x306   :  { %p875_p11 = scmp.ne.s32.totalorder %s1116_s6, %s874_s1  ;;  %p878_p12 = scmp.lt.u32.totalorder %s874_s1, %s1116_s6 }
 0x308   :  { %p880_p13 = pnand %p878_p12, %p875_p11 }
 0x30a   :  { %883 = shalt.err (!%p880_p13)
}
 0x30b   :  { %602 = dma.vmem_to_hbm [thread:$0]  %s600_s16, 32, %s1116_s6, [#allocation13]  }
 0x30c   :  { %888 = dma.done.wait [#allocation4], 96  }
 0x30d   :  { %889 = vsyncadd [#allocation4], 4294967200 }
 0x30e   :  { %890 = dma.done.wait [#allocation10], 192  }
 0x30f   :  { %891 = vsyncadd [#allocation10], 4294967104 }
 0x310   :  { %892 = dma.done.wait [#allocation13], 32  }
 0x311   :  { %893 = vsyncadd [#allocation13], 4294967264 }
 0x312   :  { %615 = vsyncpa [#allocation3], 1 }
 0x313   :  { %616 = vsyncpa [#allocation6], 1 }
 0x314   :  { %617 = vsyncpa [#allocation4], 1 }
 0x315   :  { %618 = vsyncpa [#allocation10], 1 }
 0x316   :  { %619 = vsyncpa [#allocation13], 1 }

</bundles_post_ra>
